<compile_context>
chip_gen: v7x
topology: tpu7x:2x2x1
jax: 0.10.0
libtpu: 0.0.40
codegen_flags: <defaults>
</compile_context>

<pallas_src>
import jax
import jax.numpy as jnp
from jax.experimental import pallas as pl
from jax.experimental.pallas import tpu as pltpu

IN_FEATURES = 4
OUT_FEATURES = 2
_BATCH_TILE = 1024  # rows per grid step when B is large and evenly divisible


def _linear_kernel(x_ref, w_ref, b_ref, o_ref):
    # x_ref: (TB, IN) VMEM tile | w_ref: (OUT, IN) SMEM | b_ref: (OUT,) SMEM
    x = x_ref[...].astype(jnp.float32)          # (TB, IN), f32 accumulate
    cols = []
    for o in range(OUT_FEATURES):               # static unroll: OUT*IN FMAs on VPU
        acc = x[:, 0:1] * w_ref[o, 0]
        for k in range(1, IN_FEATURES):
            acc = acc + x[:, k:k + 1] * w_ref[o, k]
        cols.append(acc + b_ref[o])             # scalar bias broadcast
    o_ref[...] = jnp.concatenate(cols, axis=-1).astype(o_ref.dtype)


def stage2_forward(x, weight, bias):
    """x: (B, 4); weight: (2, 4) PyTorch layout; bias: (2,) -> (B, 2)."""
    B = x.shape[0]
    # Tile the batch when it divides evenly; otherwise one full block.
    tb = _BATCH_TILE if (B % _BATCH_TILE == 0) else B
    grid = (B // tb,)

    return pl.pallas_call(
        _linear_kernel,
        out_shape=jax.ShapeDtypeStruct((B, OUT_FEATURES), x.dtype),
        grid_spec=pltpu.PrefetchScalarGridSpec(
            num_scalar_prefetch=0,
            grid=grid,
            in_specs=[
                pl.BlockSpec((tb, IN_FEATURES), lambda i: (i, 0)),
                pl.BlockSpec(memory_space=pltpu.MemorySpace.SMEM),  # weight
                pl.BlockSpec(memory_space=pltpu.MemorySpace.SMEM),  # bias
            ],
            out_specs=pl.BlockSpec((tb, OUT_FEATURES), lambda i: (i, 0)),
        ),
        compiler_params=pltpu.CompilerParams(
            # Batch tiles are independent -> megacore sharding on v7x.
            dimension_semantics=("parallel",),
        ),
    )(x, weight, bias)


if __name__ == "__main__":
    key = jax.random.PRNGKey(0)
    kx, kw, kb = jax.random.split(key, 3)

    # Small shapes consistent with nn.Linear(4, 2).
    batch = 8
    x = jax.random.normal(kx, (batch, IN_FEATURES), dtype=jnp.float32)
    weight = jax.random.normal(kw, (OUT_FEATURES, IN_FEATURES), dtype=jnp.float32) * 0.5
    bias = jax.random.normal(kb, (OUT_FEATURES,), dtype=jnp.float32) * 0.1

    out = jax.block_until_ready(stage2_forward(x, weight, bias))

    # Pure-JAX reference check (PyTorch Linear semantics).
    ref = x @ weight.T + bias
    assert out.shape == (batch, OUT_FEATURES)
    assert jnp.allclose(out, ref, atol=1e-5, rtol=1e-5)

    print("KERNEL_OK")
</pallas_src>

<mosaic_0001>
module attributes {stable_mosaic.version = 11 : i64} {
  func.func @_linear_kernel(%arg0: i32, %arg1: memref<8x4xf32, #tpu.memory_space<vmem>>, %arg2: memref<2x4xf32, #tpu.memory_space<smem>>, %arg3: memref<2xf32, #tpu.memory_space<smem>>, %arg4: memref<8x2xf32, #tpu.memory_space<vmem>>) attributes {dimension_semantics = [#tpu.dimension_semantics<parallel>], iteration_bounds = array<i64: 1>, scalar_prefetch = 0 : i64, scratch_operands = 0 : i64, tpu.core_type = #tpu.core_type<tc>, window_params = [{transform_indices = @transform_0, window_bounds = array<i64: 8, 4>}, {transform_indices = @transform_1, window_bounds = array<i64: 2, 4>}, {transform_indices = @transform_2, window_bounds = array<i64: 2>}, {transform_indices = @transform_3, window_bounds = array<i64: 8, 2>}]} {
    %c0 = arith.constant 0 : index
    %c0_0 = arith.constant 0 : index
    %0 = vector.load %arg1[%c0, %c0_0] : memref<8x4xf32, #tpu.memory_space<vmem>>, vector<8x4xf32>
    %1 = vector.extract_strided_slice %0 {offsets = [0, 0], sizes = [8, 1], strides = [1, 1]} : vector<8x4xf32> to vector<8x1xf32>
    %c0_1 = arith.constant 0 : index
    %c0_2 = arith.constant 0 : index
    %2 = memref.load %arg2[%c0_1, %c0_2] : memref<2x4xf32, #tpu.memory_space<smem>>
    %3 = vector.broadcast %2 : f32 to vector<8x1xf32>
    %4 = arith.mulf %1, %3 : vector<8x1xf32>
    %5 = vector.extract_strided_slice %0 {offsets = [0, 1], sizes = [8, 1], strides = [1, 1]} : vector<8x4xf32> to vector<8x1xf32>
    %c0_3 = arith.constant 0 : index
    %c1 = arith.constant 1 : index
    %6 = memref.load %arg2[%c0_3, %c1] : memref<2x4xf32, #tpu.memory_space<smem>>
    %7 = vector.broadcast %6 : f32 to vector<8x1xf32>
    %8 = arith.mulf %5, %7 : vector<8x1xf32>
    %9 = arith.addf %4, %8 : vector<8x1xf32>
    %10 = vector.extract_strided_slice %0 {offsets = [0, 2], sizes = [8, 1], strides = [1, 1]} : vector<8x4xf32> to vector<8x1xf32>
    %c0_4 = arith.constant 0 : index
    %c2 = arith.constant 2 : index
    %11 = memref.load %arg2[%c0_4, %c2] : memref<2x4xf32, #tpu.memory_space<smem>>
    %12 = vector.broadcast %11 : f32 to vector<8x1xf32>
    %13 = arith.mulf %10, %12 : vector<8x1xf32>
    %14 = arith.addf %9, %13 : vector<8x1xf32>
    %15 = vector.extract_strided_slice %0 {offsets = [0, 3], sizes = [8, 1], strides = [1, 1]} : vector<8x4xf32> to vector<8x1xf32>
    %c0_5 = arith.constant 0 : index
    %c3 = arith.constant 3 : index
    %16 = memref.load %arg2[%c0_5, %c3] : memref<2x4xf32, #tpu.memory_space<smem>>
    %17 = vector.broadcast %16 : f32 to vector<8x1xf32>
    %18 = arith.mulf %15, %17 : vector<8x1xf32>
    %19 = arith.addf %14, %18 : vector<8x1xf32>
    %c0_6 = arith.constant 0 : index
    %20 = memref.load %arg3[%c0_6] : memref<2xf32, #tpu.memory_space<smem>>
    %21 = vector.broadcast %20 : f32 to vector<8x1xf32>
    %22 = arith.addf %19, %21 : vector<8x1xf32>
    %23 = vector.extract_strided_slice %0 {offsets = [0, 0], sizes = [8, 1], strides = [1, 1]} : vector<8x4xf32> to vector<8x1xf32>
    %c1_7 = arith.constant 1 : index
    %c0_8 = arith.constant 0 : index
    %24 = memref.load %arg2[%c1_7, %c0_8] : memref<2x4xf32, #tpu.memory_space<smem>>
    %25 = vector.broadcast %24 : f32 to vector<8x1xf32>
    %26 = arith.mulf %23, %25 : vector<8x1xf32>
    %27 = vector.extract_strided_slice %0 {offsets = [0, 1], sizes = [8, 1], strides = [1, 1]} : vector<8x4xf32> to vector<8x1xf32>
    %c1_9 = arith.constant 1 : index
    %c1_10 = arith.constant 1 : index
    %28 = memref.load %arg2[%c1_9, %c1_10] : memref<2x4xf32, #tpu.memory_space<smem>>
    %29 = vector.broadcast %28 : f32 to vector<8x1xf32>
    %30 = arith.mulf %27, %29 : vector<8x1xf32>
    %31 = arith.addf %26, %30 : vector<8x1xf32>
    %32 = vector.extract_strided_slice %0 {offsets = [0, 2], sizes = [8, 1], strides = [1, 1]} : vector<8x4xf32> to vector<8x1xf32>
    %c1_11 = arith.constant 1 : index
    %c2_12 = arith.constant 2 : index
    %33 = memref.load %arg2[%c1_11, %c2_12] : memref<2x4xf32, #tpu.memory_space<smem>>
    %34 = vector.broadcast %33 : f32 to vector<8x1xf32>
    %35 = arith.mulf %32, %34 : vector<8x1xf32>
    %36 = arith.addf %31, %35 : vector<8x1xf32>
    %37 = vector.extract_strided_slice %0 {offsets = [0, 3], sizes = [8, 1], strides = [1, 1]} : vector<8x4xf32> to vector<8x1xf32>
    %c1_13 = arith.constant 1 : index
    %c3_14 = arith.constant 3 : index
    %38 = memref.load %arg2[%c1_13, %c3_14] : memref<2x4xf32, #tpu.memory_space<smem>>
    %39 = vector.broadcast %38 : f32 to vector<8x1xf32>
    %40 = arith.mulf %37, %39 : vector<8x1xf32>
    %41 = arith.addf %36, %40 : vector<8x1xf32>
    %c1_15 = arith.constant 1 : index
    %42 = memref.load %arg3[%c1_15] : memref<2xf32, #tpu.memory_space<smem>>
    %43 = vector.broadcast %42 : f32 to vector<8x1xf32>
    %44 = arith.addf %41, %43 : vector<8x1xf32>
    %45 = tpu.concatenate %22, %44 in 1 : vector<8x1xf32>, vector<8x1xf32> -> vector<8x2xf32>
    %c0_16 = arith.constant 0 : index
    %c0_17 = arith.constant 0 : index
    %46 = vector.load %arg4[%c0_16, %c0_17] : memref<8x2xf32, #tpu.memory_space<vmem>>, vector<8x2xf32>
    tpu.vector_store %arg4[%c0_16, %c0_17], %45 {strides = array<i32>} : memref<8x2xf32, #tpu.memory_space<vmem>>, vector<8x2xf32>,
    return
  }
  func.func @transform_0(%arg0: i32) -> (i32, i32) {
    %c0_i32 = arith.constant 0 : i32
    %c0_i32_0 = arith.constant 0 : i32
    return %arg0, %c0_i32 : i32, i32
  }
  func.func @transform_1(%arg0: i32) -> (i32, i32) {
    %c0_i32 = arith.constant 0 : i32
    %c0_i32_0 = arith.constant 0 : i32
    %c0_i32_1 = arith.constant 0 : i32
    return %c0_i32, %c0_i32_0 : i32, i32
  }
  func.func @transform_2(%arg0: i32) -> i32 {
    %c0_i32 = arith.constant 0 : i32
    %c0_i32_0 = arith.constant 0 : i32
    return %c0_i32 : i32
  }
  func.func @transform_3(%arg0: i32) -> (i32, i32) {
    %c0_i32 = arith.constant 0 : i32
    %c0_i32_0 = arith.constant 0 : i32
    return %arg0, %c0_i32 : i32, i32
  }
}

</mosaic_0001>

<bundles_post_ra>
// kernel: tpu_custom_call.1
= control target key start
LH: loop header
LB: loop body
LE: loop exit
PB: predicated region body
PF: predicated region fallthrough
CT: control target
= control target key end

     0   :  { %8 = vsyncpa [#allocation3], 0  ;;  %s194_s0 = inlined_call_operand.vmem [shape: f32[8,4], index: 0, kind: input, shape index: {}]   ;;  %s195_s1 = inlined_call_operand.vmem [shape: f32[2,4], index: 1, kind: input, shape index: {}]   ;;  %s196_s2 = inlined_call_operand.vmem [shape: f32[2], index: 2, kind: input, shape index: {}]   ;;  %s197_s3 = inlined_call_operand.vmem [shape: f32[8,2], index: 3, kind: output, shape index: {}]  }
   0x1   :  { %s18_s14 = sshll.u32 %s195_s1, 4  ;;  %s19_s14 = int_to_ptr.vmem [resolvable:$true] %s18_s14 }
   0x2   :  { %9 = vsyncpa [#allocation5], 0  ;;  %s28_s17 = sshll.u32 %s196_s2, 4  ;;  %s128_s18 = scalar_lea.vmem %s19_s14, 32  ;;  %s29_s17 = int_to_ptr.vmem [resolvable:$true] %s28_s17 }
   0x3   :  { %p129_p0 = scmp.ne.s32.totalorder %s19_s14, %s128_s18  ;;  %p133_p1 = scmp.lt.s32.totalorder %s19_s14, %s19_s14 }
   0x4   :  { %p134_p2 = scmp.lt.s32.totalorder %s128_s18, %s128_s18 }
   0x6   :  { %p135_p3 = por %p134_p2, %p133_p1 }
   0x8   :  { %p136_p4 = pnand %p135_p3, %p129_p0 }
   0xa   :  { %139 = shalt.err (!%p136_p4)
}
   0xb   :  { %s156_s19 = smov [#allocation2]   ;;  %s140_s20 = scalar_lea.vmem %s29_s17, 16 }
   0xc   :  { %21 = dma.vmem_to_smem %s19_s14, 32, %s156_s19, [#allocation3]  }
   0xd   :  { %p141_p5 = scmp.ne.s32.totalorder %s29_s17, %s140_s20  ;;  %p145_p6 = scmp.lt.s32.totalorder %s29_s17, %s29_s17 }
   0xe   :  { %p146_p7 = scmp.lt.s32.totalorder %s140_s20, %s140_s20 }
  0x10   :  { %p147_p8 = por %p146_p7, %p145_p6 }
  0x12   :  { %p148_p9 = pnand %p147_p8, %p141_p5 }
  0x14   :  { %151 = shalt.err (!%p148_p9)
}
  0x15   :  { %s157_s1 = smov [#allocation4]  }
  0x16   :  { %31 = dma.vmem_to_smem %s29_s17, 16, %s157_s1, [#allocation5]  }
  0x17   :  { %152 = dma.done.wait [#allocation3], 32  }
  0x18   :  { %153 = vsyncadd [#allocation3], 4294967264 }
  0x19   :  { %154 = dma.done.wait [#allocation5], 16  }
  0x1a   :  { %155 = vsyncadd [#allocation5], 4294967280 }
  0x1b   :  { %38 = sfence }
  0x1c   :  { %s118_s2 = sld [smem:[#allocation2 + $0x81]]  ;;  %s119_s21 = sld [smem:[#allocation2 + $0x82]]  ;;  %v39_v0 = vld [vmem:[%s194_s0] sm:$0xff]  ;;  %vm104_vm0 = vcmask 7168   ;;  %vm106_vm1 = vcmask 15360  }
  0x1d   :  { %s120_s22 = sld [smem:[#allocation2 + $0x83]]  ;;  %s114_s23 = sld [smem:[#allocation2 + $0x1]] }
  0x1e   :  { %s115_s26 = sld [smem:[#allocation2 + $0x2]]  ;;  %s116_s27 = sld [smem:[#allocation2 + $0x3]] }
  0x1f   :  { %s158_s28 = smov 127   ;;  %s159_s29 = smov 125  }
  0x20   :  { %s160_s30 = smov 126   ;;  %s117_s0 = sld [smem:[#allocation2 + $0x80]] }
  0x21   :  { %s121_s4 = sld [smem:[#allocation4 + $0x1]]  ;;  %s161_s5 = smov 1  }
  0x22   :  { %v74_v1 = vstv %s118_s2  ;;  %v82_v3 = vstv %s119_s21  ;;  %s40_s6 = sld [smem:[#allocation2]] }
  0x23   :  { %v75_v2 = vmul.f32 %v74_v1, %v39_v0  ;;  %v90_v4 = vstv %s120_s22  ;;  %v83_v5 = vmul.f32 %v82_v3, %v39_v0  ;;  %v44_v7 = vstv %s114_s23  ;;  %s67_s7 = sld [smem:[#allocation4]] }
  0x24   :  { %v91_v6 = vmul.f32 %v90_v4, %v39_v0  ;;  %v52_v8 = vstv %s115_s26  ;;  %v45_v9 = vmul.f32 %v44_v7, %v39_v0  ;;  %v60_v10 = vstv %s116_s27 }
  0x25   :  { %77 = vrot.lane.b32.xlu0 %v75_v2, %s158_s28  ;;  %v53_v11 = vmul.f32 %v52_v8, %v39_v0  ;;  %v61_v12 = vmul.f32 %v60_v10, %v39_v0 }
  0x26   :  { %93 = vrot.lane.b32.xlu1 %v91_v6, %s159_s29  ;;  %v71_v13 = vstv %s117_s0 }
  0x27   :  { %v72_v14 = vmul.f32 %v71_v13, %v39_v0  ;;  %v98_v20 = vstv %s121_s4 }
  0x28   :  { %v41_v23 = vstv %s40_s6 }
  0x29   :  { %85 = vrot.lane.b32.xlu0 %v83_v5, %s160_s30  ;;  %v42_v24 = vmul.f32 %v41_v23, %v39_v0  ;;  %v68_v31 = vstv %s67_s7 }
  0x2a   :  { %47 = vrot.lane.b32.xlu1 %v45_v9, %s158_s28 }
  0x2d   :  { %55 = vrot.lane.b32.xlu0 %v53_v11, %s160_s30 }
  0x2e   :  { %63 = vrot.lane.b32.xlu1 %v61_v12, %s159_s29 }
  0x97   :  { %v78_v15 = vpop.permute.xlu0 %77 }
  0x98   :  { %v80_v16 = vadd.f32 %v78_v15, %v72_v14  ;;  %v94_v18 = vpop.permute.xlu1 %93 }
  0x9b   :  { %v86_v17 = vpop.permute.xlu0 %85 }
  0x9c   :  { %v88_v19 = vadd.f32 %v86_v17, %v80_v16  ;;  %v48_v25 = vpop.permute.xlu1 %47 }
  0x9d   :  { %v50_v26 = vadd.f32 %v48_v25, %v42_v24 }
  0x9e   :  { %v96_v21 = vadd.f32 %v94_v18, %v88_v19 }
  0x9f   :  { %v56_v27 = vpop.permute.xlu0 %55 }
  0xa0   :  { %v99_v22 = vadd.f32 %v98_v20, %v96_v21  ;;  %v58_v28 = vadd.f32 %v56_v27, %v50_v26  ;;  %v64_v29 = vpop.permute.xlu1 %63 }
  0xa2   :  { %101 = vrot.lane.b32.xlu0 %v99_v22, %s161_s5  ;;  %v66_v30 = vadd.f32 %v64_v29, %v58_v28 }
  0xa4   :  { %v69_v32 = vadd.f32 %v68_v31, %v66_v30 }
 0x114   :  { %v102_v33 = vpop.permute.xlu0 %101 }
 0x115   :  { %v105_v34 = vsel %vm104_vm0, %v69_v32, %v102_v33 }
 0x116   :  { %107 = vst.msk [vmem:[%s197_s3] sm:$0xff] %vm106_vm1, %v105_v34 }
 0x117   :  { %112 = vsyncpa [#allocation3], 1 }
 0x118   :  { %113 = vsyncpa [#allocation5], 1 }

</bundles_post_ra>
